<compile_context>
chip_gen: v6e
topology: v6e:2x2x1
jax: 0.10.0
libtpu: 0.0.40
codegen_flags: <defaults>
</compile_context>

<pallas_src>
import functools

import jax
import jax.numpy as jnp
from jax import lax
from jax.experimental import pallas as pl
from jax.experimental.pallas import tpu as pltpu

LANES = 128
SUBLANES = 8
MAX_TILE_ROWS = 8192          # 8192 * 128 * 4B = 4 MiB per f32 input block
CHUNK_ROWS = 512              # in-body sub-chunk (bounds temporaries)
ACC_ROWS = 64                 # accumulator rows -> 8 independent add chains
VMEM_LIMIT_BYTES = 32 * 1024 * 1024


def _round_up(x, m):
    return -(-x // m) * m


def _cdiv(a, b):
    return -(-a // b)


def _tensorcores_per_device():
    """Best-effort TensorCore count for one JAX device (v7x exposes 2).

    Conservative: anything not positively identified as a 2-TC device uses the
    single-core configuration (always correct, no duplicate block reads).
    """
    candidates = []
    try:
        dev = jax.devices()[0]
        for attr in ("num_cores", "core_count"):
            candidates.append(getattr(dev, attr, None))
    except Exception:
        pass
    try:
        info = pltpu.get_tpu_info()
        for attr in ("num_cores", "num_tensorcores", "tensorcores_per_chip"):
            candidates.append(getattr(info, attr, None))
    except Exception:
        pass
    for val in candidates:
        if isinstance(val, int) and val == 2:
            return 2
    return 1


def _int_pow(x, gi):
    """x ** gi for a small positive integer gi via repeated multiplies."""
    result = None
    base = x
    while gi:
        if gi & 1:
            result = base if result is None else result * base
        gi >>= 1
        if gi:
            base = base * base
    return result


def _focal_elementwise(x, t, *, gamma, alpha, mode):
    """Per-element focal loss; mirrors BinaryFocalLoss.forward before .mean()."""
    x = x.astype(jnp.float32)
    t = t.astype(jnp.float32)

    if mode == "logits":
        # Exact module semantics for arbitrary (soft) targets:
        # F.binary_cross_entropy_with_logits(reduction='none'), stable form.
        bce = jnp.maximum(x, 0.0) - x * t + jnp.log1p(jnp.exp(-jnp.abs(x)))
        pt = jnp.exp(-bce)
        one_m_pt = 1.0 - pt
    elif mode == "logits_binary":
        # EUP-reduced path, valid only when targets are exactly 0/1:
        #   pt = sigmoid(x) if t==1 else 1-sigmoid(x);  bce = -log(pt)
        # (one exp + one log + approx reciprocal instead of exp+log1p+exp).
        z = jnp.exp(-jnp.abs(x))                     # in (0, 1]
        s = pl.reciprocal(1.0 + z, approx=True)      # sigmoid(|x|)
        q = z * s                                    # 1-sigmoid(|x|), no cancellation
        pos = x >= 0.0
        p = jnp.where(pos, s, q)                     # sigmoid(x)
        one_m_p = jnp.where(pos, q, s)
        t_one = t > 0.5
        pt = jnp.where(t_one, p, one_m_p)
        one_m_pt = jnp.where(t_one, one_m_p, p)
        bce = -jnp.log(pt)
    elif mode == "probs":
        # use_logits=False: inputs are probabilities; matches
        # F.binary_cross_entropy (each log term clamped at -100).
        log_p = jnp.maximum(jnp.log(x), -100.0)
        log_1mp = jnp.maximum(jnp.log(1.0 - x), -100.0)
        bce = -(t * log_p + (1.0 - t) * log_1mp)
        pt = jnp.exp(-bce)
        one_m_pt = 1.0 - pt
    else:
        raise ValueError(f"unknown mode {mode}")

    g = float(gamma)
    if g == 0.0:
        mod = jnp.ones_like(one_m_pt)
    elif g.is_integer() and 0 < g <= 16:
        mod = _int_pow(one_m_pt, int(g))      # integer gamma: no pow -> exp/log
    else:
        mod = jnp.maximum(one_m_pt, 0.0) ** g  # clamp so pow(-0/eps, g) is safe
    return float(alpha) * mod * bce


def _focal_loss_kernel(logits_ref, targets_ref, out_ref, *,
                       gamma, alpha, mode, n_valid, tile_r, chunk_r, acc_rows,
                       blocks_per_core, total_blocks):
    c = pl.program_id(0)          # (core-)parallel axis: per-core partial sums
    j = pl.program_id(1)          # reduction axis: row blocks for this core

    @pl.when(j == 0)
    def _init():
        out_ref[...] = jnp.zeros_like(out_ref)

    logical_blk = c * blocks_per_core + j
    n_chunks = tile_r // chunk_r

    def reduce_rows(v):
        # (chunk_r,128) -> (acc_rows,128): acc_rows*128 independent VPU add
        # chains of depth chunk_r//acc_rows (no cross-lane work per step).
        return v.reshape(chunk_r // acc_rows, acc_rows, LANES).sum(axis=0)

    def chunk_start(i):
        return pl.multiple_of(i * chunk_r, chunk_r)

    def focal_chunk(r0):
        return _focal_elementwise(logits_ref[pl.ds(r0, chunk_r), :],
                                  targets_ref[pl.ds(r0, chunk_r), :],
                                  gamma=gamma, alpha=alpha, mode=mode)

    # Hot path: fully in-bounds blocks -> no iota / compare / select.
    @pl.when(logical_blk < total_blocks - 1)
    def _interior():
        def body(i, carry):
            out_ref[...] += reduce_rows(focal_chunk(chunk_start(i)))
            return carry
        lax.fori_loop(0, n_chunks, body, 0, unroll=True)

    # Last logical block: may contain lane padding / pipeline-padding rows.
    # Blocks with logical_blk >= total_blocks (clamped duplicates on the second
    # core) fall through both branches and contribute nothing.
    @pl.when(logical_blk == total_blocks - 1)
    def _edge():
        def body(i, carry):
            r0 = chunk_start(i)
            focal = focal_chunk(r0)
            row_ids = lax.broadcasted_iota(jnp.int32, (chunk_r, LANES), 0)
            lane_ids = lax.broadcasted_iota(jnp.int32, (chunk_r, LANES), 1)
            # int32 global element index (fine for numel < 2**31).
            gidx = (logical_blk * tile_r + r0 + row_ids) * LANES + lane_ids
            # Keep this a select (NOT a multiply-by-mask): padded rows are
            # undefined pipeline data and can be NaN/Inf before masking.
            focal = jnp.where(gidx < n_valid, focal, 0.0)
            out_ref[...] += reduce_rows(focal)
            return carry
        lax.fori_loop(0, n_chunks, body, 0, unroll=True)


def binary_focal_loss(logits, targets, gamma=2.0, alpha=0.25, use_logits=True,
                      assume_binary_targets=False):
    """Pallas TPU implementation of BinaryFocalLoss.forward.

    assume_binary_targets=True enables an EUP-reduced path that is only valid
    when every target is exactly 0 or 1; the default path keeps exact module
    semantics for arbitrary (soft) targets.
    """
    assert logits.shape == targets.shape

    if not use_logits:
        mode = "probs"
    elif assume_binary_targets:
        mode = "logits_binary"
    else:
        mode = "logits"

    n = 1
    for d in logits.shape:
        n *= int(d)

    # Lane-major flat view; inputs keep their dtype (cast to f32 in-kernel).
    flat_l = logits.reshape(-1)
    flat_t = targets.reshape(-1)
    rem = n % LANES
    if rem:
        pad = LANES - rem
        flat_l = jnp.pad(flat_l, (0, pad))
        flat_t = jnp.pad(flat_t, (0, pad))
    rows = flat_l.shape[0] // LANES
    l2 = flat_l.reshape(rows, LANES)
    t2 = flat_t.reshape(rows, LANES)

    # Tile / chunk sizing (chunk_r | tile_r and acc_rows | chunk_r by
    # construction; blocks may extend past `rows`, masked in the edge block).
    if rows >= CHUNK_ROWS:
        tile_r = min(MAX_TILE_ROWS, _round_up(rows, CHUNK_ROWS))
        chunk_r = CHUNK_ROWS
    else:
        tile_r = _round_up(rows, SUBLANES)
        chunk_r = tile_r
    acc_rows = ACC_ROWS if chunk_r % ACC_ROWS == 0 else SUBLANES

    total_blocks = _cdiv(rows, tile_r)
    num_par = min(_tensorcores_per_device(), total_blocks)
    num_par = max(num_par, 1)
    blocks_per_core = _cdiv(total_blocks, num_par)
    grid = (num_par, blocks_per_core)

    def in_map(c, j):
        # Clamp out-of-range blocks (2nd core, odd block count) to a valid
        # block; the kernel skips their contribution entirely.
        return (jnp.minimum(c * blocks_per_core + j, total_blocks - 1), 0)

    kernel = functools.partial(
        _focal_loss_kernel,
        gamma=float(gamma), alpha=float(alpha), mode=mode, n_valid=n,
        tile_r=tile_r, chunk_r=chunk_r, acc_rows=acc_rows,
        blocks_per_core=blocks_per_core, total_blocks=total_blocks)

    first_axis = pltpu.CORE_PARALLEL if num_par > 1 else pltpu.ARBITRARY
    partials = pl.pallas_call(
        kernel,
        out_shape=jax.ShapeDtypeStruct((num_par * acc_rows, LANES), jnp.float32),
        grid_spec=pltpu.PrefetchScalarGridSpec(
            num_scalar_prefetch=0,
            grid=grid,
            in_specs=[
                pl.BlockSpec((tile_r, LANES), in_map),
                pl.BlockSpec((tile_r, LANES), in_map),
            ],
            out_specs=pl.BlockSpec((acc_rows, LANES), lambda c, j: (c, 0)),
        ),
        compiler_params=pltpu.CompilerParams(
            dimension_semantics=(first_axis, pltpu.ARBITRARY),
            vmem_limit_bytes=VMEM_LIMIT_BYTES),
    )(l2, t2)

    # Tiny final cross-lane reduction + mean normalization outside the kernel.
    return jnp.sum(partials) / jnp.float32(n)


def _reference_focal_loss(logits, targets, gamma=2.0, alpha=0.25):
    x = logits.astype(jnp.float32)
    t = targets.astype(jnp.float32)
    bce = jnp.maximum(x, 0.0) - x * t + jnp.log1p(jnp.exp(-jnp.abs(x)))
    pt = jnp.exp(-bce)
    return jnp.mean(alpha * (1.0 - pt) ** gamma * bce)


def _reference_focal_loss_probs(probs, targets, gamma=2.0, alpha=0.25):
    p = probs.astype(jnp.float32)
    t = targets.astype(jnp.float32)
    bce = -(t * jnp.maximum(jnp.log(p), -100.0)
            + (1.0 - t) * jnp.maximum(jnp.log(1.0 - p), -100.0))
    pt = jnp.exp(-bce)
    return jnp.mean(alpha * (1.0 - pt) ** gamma * bce)


if __name__ == "__main__":
    key = jax.random.PRNGKey(0)
    k1, k2 = jax.random.split(key)

    # Segmentation-style binary focal loss: NCHW logits, binary target map.
    shape = (2, 4, 16, 16)
    logits = jax.random.normal(k1, shape, dtype=jnp.float32)
    targets = (jax.random.uniform(k2, shape) > 0.5).astype(jnp.float32)

    # 1) Default path: exact module semantics (use_logits=True).
    loss = jax.block_until_ready(binary_focal_loss(logits, targets))
    ref = _reference_focal_loss(logits, targets)
    assert jnp.allclose(loss, ref, atol=1e-6, rtol=1e-5), (loss, ref)

    # 2) EUP-reduced path for exactly-binary targets (approx reciprocal ->
    #    slightly looser tolerance).
    loss_fast = jax.block_until_ready(
        binary_focal_loss(logits, targets, assume_binary_targets=True))
    assert jnp.allclose(loss_fast, ref, atol=2e-4, rtol=5e-3), (loss_fast, ref)

    # 3) use_logits=False path on probabilities.
    probs = jax.nn.sigmoid(logits)
    loss_p = jax.block_until_ready(
        binary_focal_loss(probs, targets, use_logits=False))
    ref_p = _reference_focal_loss_probs(probs, targets)
    assert jnp.allclose(loss_p, ref_p, atol=1e-6, rtol=1e-5), (loss_p, ref_p)

    print("KERNEL_OK")
</pallas_src>

<mosaic_0001>
module attributes {stable_mosaic.version = 11 : i64} {
  func.func @_focal_loss_kernel(%arg0: i32, %arg1: i32, %arg2: memref<16x128xf32, #tpu.memory_space<vmem>>, %arg3: memref<16x128xf32, #tpu.memory_space<vmem>>, %arg4: memref<8x128xf32, #tpu.memory_space<vmem>>) attributes {dimension_semantics = [#tpu.dimension_semantics<arbitrary>, #tpu.dimension_semantics<arbitrary>], iteration_bounds = array<i64: 1, 1>, scalar_prefetch = 0 : i64, scratch_operands = 0 : i64, tpu.core_type = #tpu.core_type<tc>, window_params = [{transform_indices = @transform_0, window_bounds = array<i64: 16, 128>}, {transform_indices = @transform_1, window_bounds = array<i64: 16, 128>}, {transform_indices = @transform_2, window_bounds = array<i64: 8, 128>}]} {
    %c0_i32 = arith.constant 0 : i32
    %0 = arith.cmpi eq, %arg1, %c0_i32 : i32
    %1 = arith.extui %0 : i1 to i32
    %c0_i32_0 = arith.constant 0 : i32
    %2 = arith.cmpi ne, %1, %c0_i32_0 : i32
    scf.if %2 {
      %cst = arith.constant 0.000000e+00 : f32
      %11 = vector.broadcast %cst : f32 to vector<8x128xf32>
      %c0 = arith.constant 0 : index
      %c0_5 = arith.constant 0 : index
      %12 = vector.load %arg4[%c0, %c0_5] : memref<8x128xf32, #tpu.memory_space<vmem>>, vector<8x128xf32>
      tpu.vector_store %arg4[%c0, %c0_5], %11 {strides = array<i32>} : memref<8x128xf32, #tpu.memory_space<vmem>>, vector<8x128xf32>,
    } else {
    }
    %c1_i32 = arith.constant 1 : i32
    %3 = arith.muli %arg0, %c1_i32 : i32
    %4 = arith.addi %3, %arg1 : i32
    %c0_i32_1 = arith.constant 0 : i32
    %5 = arith.cmpi slt, %4, %c0_i32_1 : i32
    %6 = arith.extui %5 : i1 to i32
    %c0_i32_2 = arith.constant 0 : i32
    %7 = arith.cmpi ne, %6, %c0_i32_2 : i32
    scf.if %7 {
      %c0_i32_5 = arith.constant 0 : i32
      %c0 = arith.constant 0 : index
      %c0_6 = arith.constant 0 : index
      %11 = vector.load %arg4[%c0, %c0_6] : memref<8x128xf32, #tpu.memory_space<vmem>>, vector<8x128xf32>
      %c16_i32 = arith.constant 16 : i32
      %12 = arith.muli %c0_i32_5, %c16_i32 : i32
      %13 = tpu.assume_multiple %12, 16 : i32
      %14 = arith.index_cast %13 : i32 to index
      %c0_7 = arith.constant 0 : index
      %15 = vector.load %arg2[%14, %c0_7] : memref<16x128xf32, #tpu.memory_space<vmem>>, vector<16x128xf32>
      %16 = arith.index_cast %13 : i32 to index
      %c0_8 = arith.constant 0 : index
      %17 = vector.load %arg3[%16, %c0_8] : memref<16x128xf32, #tpu.memory_space<vmem>>, vector<16x128xf32>
      %cst = arith.constant 0.000000e+00 : f32
      %18 = vector.broadcast %cst : f32 to vector<16x128xf32>
      %19 = arith.maximumf %15, %18 : vector<16x128xf32>
      %20 = arith.mulf %15, %17 : vector<16x128xf32>
      %21 = arith.subf %19, %20 : vector<16x128xf32>
      %22 = math.absf %15 : vector<16x128xf32>
      %cst_9 = arith.constant 0.000000e+00 : f32
      %23 = vector.broadcast %cst_9 : f32 to vector<16x128xf32>
      %24 = arith.subf %23, %22 : vector<16x128xf32>
      %25 = math.exp %24 : vector<16x128xf32>
      %26 = math.log1p %25 : vector<16x128xf32>
      %27 = arith.addf %21, %26 : vector<16x128xf32>
      %cst_10 = arith.constant 0.000000e+00 : f32
      %28 = vector.broadcast %cst_10 : f32 to vector<16x128xf32>
      %29 = arith.subf %28, %27 : vector<16x128xf32>
      %30 = math.exp %29 : vector<16x128xf32>
      %cst_11 = arith.constant 1.000000e+00 : f32
      %31 = vector.broadcast %cst_11 : f32 to vector<16x128xf32>
      %32 = arith.subf %31, %30 : vector<16x128xf32>
      %33 = arith.mulf %32, %32 : vector<16x128xf32>
      %cst_12 = arith.constant 2.500000e-01 : f32
      %34 = vector.broadcast %cst_12 : f32 to vector<16x128xf32>
      %35 = arith.mulf %34, %33 : vector<16x128xf32>
      %36 = arith.mulf %35, %27 : vector<16x128xf32>
      %37 = vector.shape_cast %36 : vector<16x128xf32> to vector<2x8x128xf32>
      %cst_13 = arith.constant dense<0.000000e+00> : vector<8x128xf32>
      %38 = vector.multi_reduction <add>, %37, %cst_13 [0] : vector<2x8x128xf32> to vector<8x128xf32>
      %39 = arith.addf %11, %38 : vector<8x128xf32>
      %c0_14 = arith.constant 0 : index
      %c0_15 = arith.constant 0 : index
      %40 = vector.load %arg4[%c0_14, %c0_15] : memref<8x128xf32, #tpu.memory_space<vmem>>, vector<8x128xf32>
      tpu.vector_store %arg4[%c0_14, %c0_15], %39 {strides = array<i32>} : memref<8x128xf32, #tpu.memory_space<vmem>>, vector<8x128xf32>,
      %c1_i32_16 = arith.constant 1 : i32
    } else {
    }
    %c0_i32_3 = arith.constant 0 : i32
    %8 = arith.cmpi eq, %4, %c0_i32_3 : i32
    %9 = arith.extui %8 : i1 to i32
    %c0_i32_4 = arith.constant 0 : i32
    %10 = arith.cmpi ne, %9, %c0_i32_4 : i32
    scf.if %10 {
      %c0_i32_5 = arith.constant 0 : i32
      %c16_i32 = arith.constant 16 : i32
      %11 = arith.muli %c0_i32_5, %c16_i32 : i32
      %12 = tpu.assume_multiple %11, 16 : i32
      %13 = arith.index_cast %12 : i32 to index
      %c0 = arith.constant 0 : index
      %14 = vector.load %arg2[%13, %c0] : memref<16x128xf32, #tpu.memory_space<vmem>>, vector<16x128xf32>
      %15 = arith.index_cast %12 : i32 to index
      %c0_6 = arith.constant 0 : index
      %16 = vector.load %arg3[%15, %c0_6] : memref<16x128xf32, #tpu.memory_space<vmem>>, vector<16x128xf32>
      %cst = arith.constant 0.000000e+00 : f32
      %17 = vector.broadcast %cst : f32 to vector<16x128xf32>
      %18 = arith.maximumf %14, %17 : vector<16x128xf32>
      %19 = arith.mulf %14, %16 : vector<16x128xf32>
      %20 = arith.subf %18, %19 : vector<16x128xf32>
      %21 = math.absf %14 : vector<16x128xf32>
      %cst_7 = arith.constant 0.000000e+00 : f32
      %22 = vector.broadcast %cst_7 : f32 to vector<16x128xf32>
      %23 = arith.subf %22, %21 : vector<16x128xf32>
      %24 = math.exp %23 : vector<16x128xf32>
      %25 = math.log1p %24 : vector<16x128xf32>
      %26 = arith.addf %20, %25 : vector<16x128xf32>
      %cst_8 = arith.constant 0.000000e+00 : f32
      %27 = vector.broadcast %cst_8 : f32 to vector<16x128xf32>
      %28 = arith.subf %27, %26 : vector<16x128xf32>
      %29 = math.exp %28 : vector<16x128xf32>
      %cst_9 = arith.constant 1.000000e+00 : f32
      %30 = vector.broadcast %cst_9 : f32 to vector<16x128xf32>
      %31 = arith.subf %30, %29 : vector<16x128xf32>
      %32 = arith.mulf %31, %31 : vector<16x128xf32>
      %cst_10 = arith.constant 2.500000e-01 : f32
      %33 = vector.broadcast %cst_10 : f32 to vector<16x128xf32>
      %34 = arith.mulf %33, %32 : vector<16x128xf32>
      %35 = arith.mulf %34, %26 : vector<16x128xf32>
      %36 = tpu.iota {dimensions = array<i32: 0>} : vector<16x128xi32>
      %37 = tpu.iota {dimensions = array<i32: 1>} : vector<16x128xi32>
      %c16_i32_11 = arith.constant 16 : i32
      %38 = arith.muli %4, %c16_i32_11 : i32
      %39 = arith.addi %38, %12 : i32
      %40 = vector.broadcast %39 : i32 to vector<16x128xi32>
      %41 = arith.addi %40, %36 : vector<16x128xi32>
      %c128_i32 = arith.constant 128 : i32
      %42 = vector.broadcast %c128_i32 : i32 to vector<16x128xi32>
      %43 = arith.muli %41, %42 : vector<16x128xi32>
      %44 = arith.addi %43, %37 : vector<16x128xi32>
      %c2048_i32 = arith.constant 2048 : i32
      %45 = vector.broadcast %c2048_i32 : i32 to vector<16x128xi32>
      %46 = arith.cmpi slt, %44, %45 : vector<16x128xi32>
      %cst_12 = arith.constant 0.000000e+00 : f32
      %47 = vector.broadcast %cst_12 : f32 to vector<16x128xf32>
      %48 = arith.select %46, %35, %47 : vector<16x128xi1>, vector<16x128xf32>
      %c0_13 = arith.constant 0 : index
      %c0_14 = arith.constant 0 : index
      %49 = vector.load %arg4[%c0_13, %c0_14] : memref<8x128xf32, #tpu.memory_space<vmem>>, vector<8x128xf32>
      %50 = vector.shape_cast %48 : vector<16x128xf32> to vector<2x8x128xf32>
      %cst_15 = arith.constant dense<0.000000e+00> : vector<8x128xf32>
      %51 = vector.multi_reduction <add>, %50, %cst_15 [0] : vector<2x8x128xf32> to vector<8x128xf32>
      %52 = arith.addf %49, %51 : vector<8x128xf32>
      %c0_16 = arith.constant 0 : index
      %c0_17 = arith.constant 0 : index
      %53 = vector.load %arg4[%c0_16, %c0_17] : memref<8x128xf32, #tpu.memory_space<vmem>>, vector<8x128xf32>
      tpu.vector_store %arg4[%c0_16, %c0_17], %52 {strides = array<i32>} : memref<8x128xf32, #tpu.memory_space<vmem>>, vector<8x128xf32>,
      %c1_i32_18 = arith.constant 1 : i32
    } else {
    }
    return
  }
  func.func @transform_0(%arg0: i32, %arg1: i32) -> (i32, i32) {
    %c1_i32 = arith.constant 1 : i32
    %0 = arith.muli %arg0, %c1_i32 : i32
    %1 = arith.addi %0, %arg1 : i32
    %c0_i32 = arith.constant 0 : i32
    %2 = arith.minsi %1, %c0_i32 : i32
    %c0_i32_0 = arith.constant 0 : i32
    %c0_i32_1 = arith.constant 0 : i32
    return %2, %c0_i32_0 : i32, i32
  }
  func.func @transform_1(%arg0: i32, %arg1: i32) -> (i32, i32) {
    %c1_i32 = arith.constant 1 : i32
    %0 = arith.muli %arg0, %c1_i32 : i32
    %1 = arith.addi %0, %arg1 : i32
    %c0_i32 = arith.constant 0 : i32
    %2 = arith.minsi %1, %c0_i32 : i32
    %c0_i32_0 = arith.constant 0 : i32
    %c0_i32_1 = arith.constant 0 : i32
    return %2, %c0_i32_0 : i32, i32
  }
  func.func @transform_2(%arg0: i32, %arg1: i32) -> (i32, i32) {
    %c0_i32 = arith.constant 0 : i32
    %c0_i32_0 = arith.constant 0 : i32
    return %arg0, %c0_i32 : i32, i32
  }
}

</mosaic_0001>

<bundles_post_ra>
// kernel: tpu_custom_call.1
= control target key start
LH: loop header
LB: loop body
LE: loop exit
PB: predicated region body
PF: predicated region fallthrough
CT: control target
= control target key end

     0   :  { %7 = vsyncpa [#allocation3], 0  ;;  %s337_s0 = inlined_call_operand.hbm [shape: f32[16,128], index: 0, kind: input, shape index: {}]   ;;  %s338_s1 = inlined_call_operand.hbm [shape: f32[16,128], index: 1, kind: input, shape index: {}]   ;;  %s339_s2 = inlined_call_operand.hbm [shape: f32[8,128], index: 2, kind: output, shape index: {}]  }
   0x1   :  { %8 = vsyncpa [#allocation6], 0 }
   0x2   :  { %9 = vsyncpa [#allocation4], 0  ;;  %s308_s9 = smov [#allocation2]  }
   0x3   :  { %s21_s10 = sshll.u32 %s308_s9, 4  ;;  %s22_s10 = int_to_ptr.vmem [resolvable:$true] %s21_s10 }
   0x4   :  { %s250_s11 = scalar_lea.vmem %s22_s10, 256  ;;  %p255_p1 = scmp.lt.s32.totalorder %s22_s10, %s22_s10 }
   0x5   :  { %p251_p0 = scmp.ne.s32.totalorder %s22_s10, %s250_s11  ;;  %p256_p2 = scmp.lt.s32.totalorder %s250_s11, %s250_s11 }
   0x7   :  { %p257_p3 = por %p256_p2, %p255_p1 }
   0x9   :  { %p258_p4 = pnand %p257_p3, %p251_p0 }
   0xb   :  { %261 = shalt.err (!%p258_p4)
}
   0xc   :  { %s309_s12 = smov 128   ;;  %s310_s13 = smov 8  }
   0xd   :  { %27 = dma.hbm_to_vmem [thread:$0]  %s337_s0, 256, %s22_s10, [#allocation3], %s309_s12, %s309_s12, %s310_s13  }
   0xe   :  { %s311_s16 = smov [#allocation5]  }
   0xf   :  { %s39_s17 = sshll.u32 %s311_s16, 4  ;;  %s40_s17 = int_to_ptr.vmem [resolvable:$true] %s39_s17 }
  0x10   :  { %s270_s18 = scalar_lea.vmem %s40_s17, 256  ;;  %p275_p6 = scmp.lt.s32.totalorder %s40_s17, %s40_s17 }
  0x11   :  { %p271_p5 = scmp.ne.s32.totalorder %s40_s17, %s270_s18  ;;  %p276_p7 = scmp.lt.s32.totalorder %s270_s18, %s270_s18 }
  0x13   :  { %p277_p8 = por %p276_p7, %p275_p6 }
  0x15   :  { %p278_p9 = pnand %p277_p8, %p271_p5 }
  0x17   :  { %281 = shalt.err (!%p278_p9)
}
  0x18   :  { %45 = dma.hbm_to_vmem [thread:$0]  %s338_s1, 256, %s40_s17, [#allocation6], %s309_s12, %s309_s12, %s310_s13  }
  0x19   :  { %302 = dma.done.wait [#allocation3], 256  }
  0x1a   :  { %303 = vsyncadd [#allocation3], 4294967040 }
  0x1b   :  { %304 = dma.done.wait [#allocation6], 256  }
  0x1c   :  { %305 = vsyncadd [#allocation6], 4294967040  ;;  %v130_v0 = vld [vmem:[#allocation2] sm:$0xff]  ;;  %v131_v1 = vld [vmem:[#allocation2 + $0x8] sm:$0xff]  ;;  %v182_v40 = vlaneseq  ;;  %s312_s0 = smov [#allocation7]  }
  0x1d   :  { %v140_v2 = vand.u32 2147483647, %v130_v0  ;;  %v141_v3 = vand.u32 2147483647, %v131_v1  ;;  %v132_v14 = vld [vmem:[#allocation5] sm:$0xff]  ;;  %v133_v15 = vld [vmem:[#allocation5 + $0x8] sm:$0xff] }
  0x1e   :  { %v134_v17 = vmax.f32 %v130_v0, 0.0  ;;  %v136_v18 = vmul.f32 %v132_v14, %v130_v0  ;;  %v135_v21 = vmax.f32 %v131_v1, 0.0  ;;  %v137_v22 = vmul.f32 %v133_v15, %v131_v1  ;;  %s210_s1 = sshll.u32 %s312_s0, 4  ;;  %s211_s1 = int_to_ptr.vmem [resolvable:$true] %s210_s1 }
  0x1f   :  { %v142_v4 = vsub.f32 0.0, %v140_v2  ;;  %v143_v5 = vsub.f32 0.0, %v141_v3  ;;  %v183_v41 = vshrl.u32 %v182_v40, 7  ;;  %v186_v43 = vand.u32 127, %v182_v40  ;;  %s282_s21 = scalar_lea.vmem %s211_s1, 128  ;;  %p287_p11 = scmp.lt.s32.totalorder %s211_s1, %s211_s1 }
  0x20   :  { %v138_v26 = vsub.f32 %v134_v17, %v136_v18  ;;  %v139_v29 = vsub.f32 %v135_v21, %v137_v22  ;;  %p283_p10 = scmp.ne.s32.totalorder %s211_s1, %s282_s21  ;;  %p288_p12 = scmp.lt.s32.totalorder %s282_s21, %s282_s21 }
  0x21   :  { %v144_v6 = vmul.f32 1.442695, %v142_v4  ;;  %v146_v7 = vmul.f32 1.442695, %v143_v5  ;;  %v184_v42 = vadd.s32 8, %v183_v41  ;;  %v192_v44 = vmul.u32 128, %v183_v41 }
  0x22   :  { %p289_p13 = por %p288_p12, %p287_p11 }
  0x23   :  { %230 = vpow2.f32 %v144_v6  ;;  %v193_v45 = vmul.u32 128, %v184_v42  ;;  %v194_v50 = vadd.s32 %v192_v44, %v186_v43 }
  0x24   :  { %232 = vpow2.f32 %v146_v7  ;;  %p290_p0 = pnand %p289_p13, %p283_p10 }
  0x25   :  { %v195_v52 = vadd.s32 %v193_v45, %v186_v43  ;;  %vm196_vm2 = vcmp.lt.s32.totalorder %v194_v50, 2048 }
  0x27   :  { %vm197_vm3 = vcmp.lt.s32.totalorder %v195_v52, 2048 }
  0x30   :  { %v231_v8 = vpop.eup %230 }
  0x31   :  { %v233_v9 = vpop.eup %232  ;;  %v148_v10 = vadd.f32 1.0, %v231_v8  ;;  %v151_v12 = vmul.f32 -0.5, %v231_v8  ;;  %v154_v19 = vand.u32 2147483647, %v231_v8 }
  0x32   :  { %v157_v11 = vadd.f32 1.0, %v233_v9  ;;  %v160_v13 = vmul.f32 -0.5, %v233_v9  ;;  %v163_v23 = vand.u32 2147483647, %v233_v9 }
  0x33   :  { %234 = vlog2.f32 %v148_v10  ;;  %v152_v16 = vadd.f32 1.0, %v151_v12  ;;  %vm155_vm0 = vcmp.lt.f32.partialorder %v154_v19, 0.0004427343 }
  0x34   :  { %236 = vlog2.f32 %v157_v11  ;;  %v161_v20 = vadd.f32 1.0, %v160_v13  ;;  %vm164_vm1 = vcmp.lt.f32.partialorder %v163_v23, 0.0004427343 }
  0x35   :  { %v153_v24 = vmul.f32 %v231_v8, %v152_v16 }
  0x36   :  { %v162_v27 = vmul.f32 %v233_v9, %v161_v20 }
  0x40   :  { %v235_v25 = vpop.eup %234 }
  0x41   :  { %v237_v28 = vpop.eup %236  ;;  %v150_v30 = vmul.f32 0.6931472, %v235_v25 }
  0x42   :  { %v159_v31 = vmul.f32 0.6931472, %v237_v28 }
  0x43   :  { %v156_v32 = vsel %vm155_vm0, %v153_v24, %v150_v30 }
  0x44   :  { %v165_v33 = vsel %vm164_vm1, %v162_v27, %v159_v31  ;;  %v166_v34 = vadd.f32 %v156_v32, %v138_v26 }
  0x45   :  { %v167_v35 = vadd.f32 %v165_v33, %v139_v29 }
  0x46   :  { %v168_v36 = vsub.f32 0.0, %v166_v34 }
  0x47   :  { %v169_v37 = vsub.f32 0.0, %v167_v35 }
  0x48   :  { %v170_v38 = vmul.f32 1.442695, %v168_v36 }
  0x49   :  { %v172_v39 = vmul.f32 1.442695, %v169_v37 }
  0x4a   :  { %238 = vpow2.f32 %v170_v38 }
  0x4b   :  { %240 = vpow2.f32 %v172_v39 }
  0x57   :  { %v239_v46 = vpop.eup %238 }
  0x58   :  { %v241_v47 = vpop.eup %240  ;;  %v174_v48 = vsub.f32 1.0, %v239_v46 }
  0x59   :  { %v175_v49 = vsub.f32 1.0, %v241_v47 }
  0x5a   :  { %v176_v51 = vmul.f32 %v174_v48, %v174_v48 }
  0x5b   :  { %v177_v53 = vmul.f32 %v175_v49, %v175_v49 }
  0x5c   :  { %v178_v54 = vmul.f32 0.25, %v176_v51 }
  0x5d   :  { %v179_v55 = vmul.f32 0.25, %v177_v53 }
  0x5e   :  { %v180_v56 = vmul.f32 %v178_v54, %v166_v34 }
  0x5f   :  { %v181_v57 = vmul.f32 %v179_v55, %v167_v35 }
  0x60   :  { %v198_v58 = vsel %vm196_vm2, %v180_v56, 0.0 }
  0x61   :  { %v199_v59 = vsel %vm197_vm3, %v181_v57, 0.0 }
  0x62   :  { %v201_v60 = vadd.f32 %v199_v59, %v198_v58 }
  0x64   :  { %203 = vst [vmem:[#allocation7] sm:$0xff] %v201_v60 }
  0x65   :  { %293 = shalt.err (!%p290_p0)
}
  0x66   :  { %213 = dma.vmem_to_hbm [thread:$0]  %s211_s1, 128, %s339_s2, [#allocation4]  }
  0x67   :  { %306 = dma.done.wait [#allocation4], 128  }
  0x68   :  { %307 = vsyncadd [#allocation4], 4294967168 }
  0x69   :  { %217 = vsyncpa [#allocation3], 1 }
  0x6a   :  { %218 = vsyncpa [#allocation6], 1 }
  0x6b   :  { %219 = vsyncpa [#allocation4], 1 }

</bundles_post_ra>
